<compile_context>
chip_gen: v7x
topology: tpu7x:2x2x1
jax: 0.10.0
libtpu: 0.0.40
codegen_flags: <defaults>
</compile_context>

<pallas_src>
import jax
import jax.numpy as jnp
from jax.experimental import pallas as pl
from jax.experimental.pallas import tpu as pltpu

LN_EPS = 1e-5  # nn.LayerNorm default


def _layernorm(h, gamma, beta):
    # One-pass statistics: var = E[x^2] - mu^2 (halves the XLU reductions per LN).
    n = h.shape[-1]
    inv_n = 1.0 / float(n)
    s = jnp.sum(h, axis=-1, keepdims=True)
    s2 = jnp.sum(h * h, axis=-1, keepdims=True)
    mu = s * inv_n
    var = s2 * inv_n - mu * mu
    return (h - mu) * jax.lax.rsqrt(var + LN_EPS) * gamma + beta


def critic_kernel(s_ref, a_ref,
                  w1_ref, b1_ref, g1_ref, be1_ref,
                  w2_ref, b2_ref, g2_ref, be2_ref,
                  wa_ref, ba_ref,
                  w3_ref, b3_ref, g3_ref, be3_ref,
                  wq_ref, bq_ref,
                  o_ref):
    s = s_ref[...]
    a = a_ref[...]

    # fc1 -> bn1 (LayerNorm) -> relu
    h1 = jnp.dot(s, w1_ref[...], preferred_element_type=jnp.float32) + b1_ref[...]
    h1 = _layernorm(h1, g1_ref[...], be1_ref[...])
    h1 = jnp.maximum(h1, 0.0)

    # fc2 -> bn2 (LayerNorm)      (no relu yet, per the PyTorch forward)
    sv = jnp.dot(h1, w2_ref[...], preferred_element_type=jnp.float32) + b2_ref[...]
    sv = _layernorm(sv, g2_ref[...], be2_ref[...])

    # action_value(action)
    av = jnp.dot(a, wa_ref[...], preferred_element_type=jnp.float32) + ba_ref[...]

    # relu(state_value + action_value)
    h2 = jnp.maximum(sv + av, 0.0)

    # fc3 -> bn3 (LayerNorm) -> relu
    h3 = jnp.dot(h2, w3_ref[...], preferred_element_type=jnp.float32) + b3_ref[...]
    h3 = _layernorm(h3, g3_ref[...], be3_ref[...])
    h3 = jnp.maximum(h3, 0.0)

    # q head: [fc3, 1] matmul is a degenerate MXU shape -> do it on the
    # VPU (multiply) + XLU (lane reduce) instead. wq is a [1, fc3] row.
    q = jnp.sum(h3 * wq_ref[...], axis=-1, keepdims=True) + bq_ref[...]
    o_ref[...] = q.astype(o_ref.dtype)


def _batch_spec(block_rows, feat):
    # Activation tiles: stream along the batch grid axis.
    return pl.BlockSpec((block_rows, feat), lambda i: (i, 0))


def _resident_spec(shape):
    # Parameters: constant block index -> stay resident in VMEM across grid steps.
    return pl.BlockSpec(shape, lambda i: (0, 0))


def critic_network_forward(state, action, params):
    """state: [B, input_dims*n_agents], action: [B, n_actions*n_agents] -> [B, 1] f32."""
    B, in_s = state.shape
    _, in_a = action.shape
    fc1 = params["w1"].shape[1]
    fc2 = params["w2"].shape[1]
    fc3 = params["w3"].shape[1]

    # q weight passed lane-major as a [1, fc3] row for the VPU/XLU q head.
    wq_row = params["wq"].reshape(1, fc3)

    # Batch tile: full batch when small; otherwise 512-row tiles (multiple of 8).
    TB = B if B <= 512 else 512
    grid = (pl.cdiv(B, TB),)

    args = (state, action,
            params["w1"], params["b1"], params["g1"], params["be1"],
            params["w2"], params["b2"], params["g2"], params["be2"],
            params["wa"], params["ba"],
            params["w3"], params["b3"], params["g3"], params["be3"],
            wq_row, params["bq"])

    in_specs = [
        _batch_spec(TB, in_s),              # state
        _batch_spec(TB, in_a),              # action
        _resident_spec(params["w1"].shape), _resident_spec(params["b1"].shape),
        _resident_spec(params["g1"].shape), _resident_spec(params["be1"].shape),
        _resident_spec(params["w2"].shape), _resident_spec(params["b2"].shape),
        _resident_spec(params["g2"].shape), _resident_spec(params["be2"].shape),
        _resident_spec(params["wa"].shape), _resident_spec(params["ba"].shape),
        _resident_spec(params["w3"].shape), _resident_spec(params["b3"].shape),
        _resident_spec(params["g3"].shape), _resident_spec(params["be3"].shape),
        _resident_spec(wq_row.shape), _resident_spec(params["bq"].shape),
    ]
    out_spec = pl.BlockSpec((TB, 1), lambda i: (i, 0))
    # TODO(synk): if B grows into the thousands, emit the output lane-major
    # ((1, B) slab) to avoid masked lane-width-1 stores.

    n_params = sum(int(p.size) for p in params.values())
    flops = 2 * B * (in_s * fc1 + fc1 * fc2 + in_a * fc2 + fc2 * fc3 + fc3)
    bytes_accessed = 4 * (B * (in_s + in_a + 1) + n_params)
    cost = pl.CostEstimate(flops=flops, transcendentals=3 * B,
                           bytes_accessed=bytes_accessed)

    return pl.pallas_call(
        critic_kernel,
        out_shape=jax.ShapeDtypeStruct((B, 1), jnp.float32),
        grid=grid,
        in_specs=in_specs,
        out_specs=out_spec,
        compiler_params=pltpu.CompilerParams(
            dimension_semantics=("parallel",)),
        cost_estimate=cost,
    )(*args)


def init_params(key, in_state, in_action, fc1_dims, fc2_dims, fc3_dims):
    """Deterministic init matching the PyTorch __init__ (it uses
    1/sqrt(weight.size(0)) == 1/sqrt(out_features), as written)."""
    keys = jax.random.split(key, 10)
    f1 = 1.0 / jnp.sqrt(jnp.float32(fc1_dims))
    f2 = 1.0 / jnp.sqrt(jnp.float32(fc2_dims))
    f3 = 1.0 / jnp.sqrt(jnp.float32(fc3_dims))
    f4 = 0.003
    f5 = 1.0 / jnp.sqrt(jnp.float32(fc2_dims))   # action_value.weight.size(0) == fc2_dims

    def uni(k, shape, lim):
        return jax.random.uniform(k, shape, jnp.float32, -lim, lim)

    return {
        # Linear weights stored pre-transposed: [in, out]
        "w1": uni(keys[0], (in_state, fc1_dims), f1),
        "b1": uni(keys[1], (1, fc1_dims), f1),
        "g1": jnp.ones((1, fc1_dims), jnp.float32),
        "be1": jnp.zeros((1, fc1_dims), jnp.float32),
        "w2": uni(keys[2], (fc1_dims, fc2_dims), f2),
        "b2": uni(keys[3], (1, fc2_dims), f2),
        "g2": jnp.ones((1, fc2_dims), jnp.float32),
        "be2": jnp.zeros((1, fc2_dims), jnp.float32),
        "wa": uni(keys[4], (in_action, fc2_dims), f5),
        "ba": uni(keys[5], (1, fc2_dims), f5),
        "w3": uni(keys[6], (fc2_dims, fc3_dims), f3),
        "b3": uni(keys[7], (1, fc3_dims), f3),
        "g3": jnp.ones((1, fc3_dims), jnp.float32),
        "be3": jnp.zeros((1, fc3_dims), jnp.float32),
        "wq": uni(keys[8], (fc3_dims, 1), f4),
        "bq": uni(keys[9], (1, 1), f4),
    }


def _reference(state, action, p):
    def ln(h, g, b):
        mu = jnp.mean(h, axis=-1, keepdims=True)
        var = jnp.mean((h - mu) ** 2, axis=-1, keepdims=True)
        return (h - mu) * jax.lax.rsqrt(var + LN_EPS) * g + b

    h1 = jnp.maximum(ln(state @ p["w1"] + p["b1"], p["g1"], p["be1"]), 0.0)
    sv = ln(h1 @ p["w2"] + p["b2"], p["g2"], p["be2"])
    av = action @ p["wa"] + p["ba"]
    h2 = jnp.maximum(sv + av, 0.0)
    h3 = jnp.maximum(ln(h2 @ p["w3"] + p["b3"], p["g3"], p["be3"]), 0.0)
    return h3 @ p["wq"] + p["bq"]


if __name__ == "__main__":
    # Small shapes consistent with the module:
    # input_dims=8, n_agents=4 -> 32 state features; n_actions=2 -> 8 action features.
    batch, input_dims, n_agents, n_actions = 8, 8, 4, 2
    fc1_dims, fc2_dims, fc3_dims = 64, 32, 32
    in_state = input_dims * n_agents
    in_action = n_actions * n_agents

    key = jax.random.PRNGKey(0)
    kparams, kstate, kaction = jax.random.split(key, 3)
    params = init_params(kparams, in_state, in_action, fc1_dims, fc2_dims, fc3_dims)
    state = jax.random.normal(kstate, (batch, in_state), jnp.float32)
    action = jax.random.normal(kaction, (batch, in_action), jnp.float32)

    out = critic_network_forward(state, action, params)
    out = jax.block_until_ready(out)

    ref = _reference(state, action, params)
    assert out.shape == (batch, 1)
    assert jnp.allclose(out, ref, atol=1e-4, rtol=1e-4), (
        f"max abs err {float(jnp.max(jnp.abs(out - ref)))}")
    print("KERNEL_OK")
</pallas_src>

<mosaic_0001>
module attributes {stable_mosaic.version = 11 : i64} {
  func.func @critic_kernel(%arg0: i32, %arg1: memref<8x32xf32, #tpu.memory_space<vmem>>, %arg2: memref<8x8xf32, #tpu.memory_space<vmem>>, %arg3: memref<32x64xf32, #tpu.memory_space<vmem>>, %arg4: memref<1x64xf32, #tpu.memory_space<vmem>>, %arg5: memref<1x64xf32, #tpu.memory_space<vmem>>, %arg6: memref<1x64xf32, #tpu.memory_space<vmem>>, %arg7: memref<64x32xf32, #tpu.memory_space<vmem>>, %arg8: memref<1x32xf32, #tpu.memory_space<vmem>>, %arg9: memref<1x32xf32, #tpu.memory_space<vmem>>, %arg10: memref<1x32xf32, #tpu.memory_space<vmem>>, %arg11: memref<8x32xf32, #tpu.memory_space<vmem>>, %arg12: memref<1x32xf32, #tpu.memory_space<vmem>>, %arg13: memref<32x32xf32, #tpu.memory_space<vmem>>, %arg14: memref<1x32xf32, #tpu.memory_space<vmem>>, %arg15: memref<1x32xf32, #tpu.memory_space<vmem>>, %arg16: memref<1x32xf32, #tpu.memory_space<vmem>>, %arg17: memref<1x32xf32, #tpu.memory_space<vmem>>, %arg18: memref<1x1xf32, #tpu.memory_space<vmem>>, %arg19: memref<8x1xf32, #tpu.memory_space<vmem>>) attributes {dimension_semantics = [#tpu.dimension_semantics<parallel>], iteration_bounds = array<i64: 1>, scalar_prefetch = 0 : i64, scratch_operands = 0 : i64, tpu.core_type = #tpu.core_type<tc>, window_params = [{transform_indices = @transform_0, window_bounds = array<i64: 8, 32>}, {transform_indices = @transform_1, window_bounds = array<i64: 8, 8>}, {pipeline_mode = #tpu.pipeline_mode<synchronous>, transform_indices = @transform_2, window_bounds = array<i64: 32, 64>}, {pipeline_mode = #tpu.pipeline_mode<synchronous>, transform_indices = @transform_3, window_bounds = array<i64: 1, 64>}, {pipeline_mode = #tpu.pipeline_mode<synchronous>, transform_indices = @transform_4, window_bounds = array<i64: 1, 64>}, {pipeline_mode = #tpu.pipeline_mode<synchronous>, transform_indices = @transform_5, window_bounds = array<i64: 1, 64>}, {pipeline_mode = #tpu.pipeline_mode<synchronous>, transform_indices = @transform_6, window_bounds = array<i64: 64, 32>}, {pipeline_mode = #tpu.pipeline_mode<synchronous>, transform_indices = @transform_7, window_bounds = array<i64: 1, 32>}, {pipeline_mode = #tpu.pipeline_mode<synchronous>, transform_indices = @transform_8, window_bounds = array<i64: 1, 32>}, {pipeline_mode = #tpu.pipeline_mode<synchronous>, transform_indices = @transform_9, window_bounds = array<i64: 1, 32>}, {pipeline_mode = #tpu.pipeline_mode<synchronous>, transform_indices = @transform_10, window_bounds = array<i64: 8, 32>}, {pipeline_mode = #tpu.pipeline_mode<synchronous>, transform_indices = @transform_11, window_bounds = array<i64: 1, 32>}, {pipeline_mode = #tpu.pipeline_mode<synchronous>, transform_indices = @transform_12, window_bounds = array<i64: 32, 32>}, {pipeline_mode = #tpu.pipeline_mode<synchronous>, transform_indices = @transform_13, window_bounds = array<i64: 1, 32>}, {pipeline_mode = #tpu.pipeline_mode<synchronous>, transform_indices = @transform_14, window_bounds = array<i64: 1, 32>}, {pipeline_mode = #tpu.pipeline_mode<synchronous>, transform_indices = @transform_15, window_bounds = array<i64: 1, 32>}, {pipeline_mode = #tpu.pipeline_mode<synchronous>, transform_indices = @transform_16, window_bounds = array<i64: 1, 32>}, {pipeline_mode = #tpu.pipeline_mode<synchronous>, transform_indices = @transform_17, window_bounds = array<i64: 1, 1>}, {transform_indices = @transform_18, window_bounds = array<i64: 8, 1>}]} {
    %c0 = arith.constant 0 : index
    %c0_0 = arith.constant 0 : index
    %0 = vector.load %arg1[%c0, %c0_0] : memref<8x32xf32, #tpu.memory_space<vmem>>, vector<8x32xf32>
    %c0_1 = arith.constant 0 : index
    %c0_2 = arith.constant 0 : index
    %1 = vector.load %arg2[%c0_1, %c0_2] : memref<8x8xf32, #tpu.memory_space<vmem>>, vector<8x8xf32>
    %c0_3 = arith.constant 0 : index
    %c0_4 = arith.constant 0 : index
    %2 = vector.load %arg3[%c0_3, %c0_4] : memref<32x64xf32, #tpu.memory_space<vmem>>, vector<32x64xf32>
    %cst = arith.constant dense<0.000000e+00> : vector<8x64xf32>
    %3 = tpu.matmul %0, %2, %cst {dimension_numbers = #tpu.dot_dimension_numbers<[1], [0], [0], [1], [0, 0, 1, 1], [], []>} : vector<8x32xf32>, vector<32x64xf32>, vector<8x64xf32> -> vector<8x64xf32>
    %c0_5 = arith.constant 0 : index
    %c0_6 = arith.constant 0 : index
    %4 = vector.load %arg4[%c0_5, %c0_6] : memref<1x64xf32, #tpu.memory_space<vmem>>, vector<1x64xf32>
    %5 = vector.broadcast %4 : vector<1x64xf32> to vector<8x64xf32>
    %6 = arith.addf %3, %5 : vector<8x64xf32>
    %c0_7 = arith.constant 0 : index
    %c0_8 = arith.constant 0 : index
    %7 = vector.load %arg5[%c0_7, %c0_8] : memref<1x64xf32, #tpu.memory_space<vmem>>, vector<1x64xf32>
    %c0_9 = arith.constant 0 : index
    %c0_10 = arith.constant 0 : index
    %8 = vector.load %arg6[%c0_9, %c0_10] : memref<1x64xf32, #tpu.memory_space<vmem>>, vector<1x64xf32>
    %cst_11 = arith.constant dense<0.000000e+00> : vector<8xf32>
    %9 = vector.multi_reduction <add>, %6, %cst_11 [1] : vector<8x64xf32> to vector<8xf32>
    %10 = vector.shape_cast %9 : vector<8xf32> to vector<8x1xf32>
    %11 = arith.mulf %6, %6 : vector<8x64xf32>
    %cst_12 = arith.constant dense<0.000000e+00> : vector<8xf32>
    %12 = vector.multi_reduction <add>, %11, %cst_12 [1] : vector<8x64xf32> to vector<8xf32>
    %13 = vector.shape_cast %12 : vector<8xf32> to vector<8x1xf32>
    %cst_13 = arith.constant 1.562500e-02 : f32
    %14 = vector.broadcast %cst_13 : f32 to vector<8x1xf32>
    %15 = arith.mulf %10, %14 : vector<8x1xf32>
    %cst_14 = arith.constant 1.562500e-02 : f32
    %16 = vector.broadcast %cst_14 : f32 to vector<8x1xf32>
    %17 = arith.mulf %13, %16 : vector<8x1xf32>
    %18 = arith.mulf %15, %15 : vector<8x1xf32>
    %19 = arith.subf %17, %18 : vector<8x1xf32>
    %20 = vector.broadcast %15 : vector<8x1xf32> to vector<8x64xf32>
    %21 = arith.subf %6, %20 : vector<8x64xf32>
    %cst_15 = arith.constant 9.99999974E-6 : f32
    %22 = vector.broadcast %cst_15 : f32 to vector<8x1xf32>
    %23 = arith.addf %19, %22 : vector<8x1xf32>
    %24 = math.rsqrt %23 : vector<8x1xf32>
    %25 = vector.broadcast %24 : vector<8x1xf32> to vector<8x64xf32>
    %26 = arith.mulf %21, %25 : vector<8x64xf32>
    %27 = vector.broadcast %7 : vector<1x64xf32> to vector<8x64xf32>
    %28 = arith.mulf %26, %27 : vector<8x64xf32>
    %29 = vector.broadcast %8 : vector<1x64xf32> to vector<8x64xf32>
    %30 = arith.addf %28, %29 : vector<8x64xf32>
    %cst_16 = arith.constant 0.000000e+00 : f32
    %31 = vector.broadcast %cst_16 : f32 to vector<8x64xf32>
    %32 = arith.maximumf %30, %31 : vector<8x64xf32>
    %c0_17 = arith.constant 0 : index
    %c0_18 = arith.constant 0 : index
    %33 = vector.load %arg7[%c0_17, %c0_18] : memref<64x32xf32, #tpu.memory_space<vmem>>, vector<64x32xf32>
    %cst_19 = arith.constant dense<0.000000e+00> : vector<8x32xf32>
    %34 = tpu.matmul %32, %33, %cst_19 {dimension_numbers = #tpu.dot_dimension_numbers<[1], [0], [0], [1], [0, 0, 1, 1], [], []>} : vector<8x64xf32>, vector<64x32xf32>, vector<8x32xf32> -> vector<8x32xf32>
    %c0_20 = arith.constant 0 : index
    %c0_21 = arith.constant 0 : index
    %35 = vector.load %arg8[%c0_20, %c0_21] : memref<1x32xf32, #tpu.memory_space<vmem>>, vector<1x32xf32>
    %36 = vector.broadcast %35 : vector<1x32xf32> to vector<8x32xf32>
    %37 = arith.addf %34, %36 : vector<8x32xf32>
    %c0_22 = arith.constant 0 : index
    %c0_23 = arith.constant 0 : index
    %38 = vector.load %arg9[%c0_22, %c0_23] : memref<1x32xf32, #tpu.memory_space<vmem>>, vector<1x32xf32>
    %c0_24 = arith.constant 0 : index
    %c0_25 = arith.constant 0 : index
    %39 = vector.load %arg10[%c0_24, %c0_25] : memref<1x32xf32, #tpu.memory_space<vmem>>, vector<1x32xf32>
    %cst_26 = arith.constant dense<0.000000e+00> : vector<8xf32>
    %40 = vector.multi_reduction <add>, %37, %cst_26 [1] : vector<8x32xf32> to vector<8xf32>
    %41 = vector.shape_cast %40 : vector<8xf32> to vector<8x1xf32>
    %42 = arith.mulf %37, %37 : vector<8x32xf32>
    %cst_27 = arith.constant dense<0.000000e+00> : vector<8xf32>
    %43 = vector.multi_reduction <add>, %42, %cst_27 [1] : vector<8x32xf32> to vector<8xf32>
    %44 = vector.shape_cast %43 : vector<8xf32> to vector<8x1xf32>
    %cst_28 = arith.constant 3.125000e-02 : f32
    %45 = vector.broadcast %cst_28 : f32 to vector<8x1xf32>
    %46 = arith.mulf %41, %45 : vector<8x1xf32>
    %cst_29 = arith.constant 3.125000e-02 : f32
    %47 = vector.broadcast %cst_29 : f32 to vector<8x1xf32>
    %48 = arith.mulf %44, %47 : vector<8x1xf32>
    %49 = arith.mulf %46, %46 : vector<8x1xf32>
    %50 = arith.subf %48, %49 : vector<8x1xf32>
    %51 = vector.broadcast %46 : vector<8x1xf32> to vector<8x32xf32>
    %52 = arith.subf %37, %51 : vector<8x32xf32>
    %cst_30 = arith.constant 9.99999974E-6 : f32
    %53 = vector.broadcast %cst_30 : f32 to vector<8x1xf32>
    %54 = arith.addf %50, %53 : vector<8x1xf32>
    %55 = math.rsqrt %54 : vector<8x1xf32>
    %56 = vector.broadcast %55 : vector<8x1xf32> to vector<8x32xf32>
    %57 = arith.mulf %52, %56 : vector<8x32xf32>
    %58 = vector.broadcast %38 : vector<1x32xf32> to vector<8x32xf32>
    %59 = arith.mulf %57, %58 : vector<8x32xf32>
    %60 = vector.broadcast %39 : vector<1x32xf32> to vector<8x32xf32>
    %61 = arith.addf %59, %60 : vector<8x32xf32>
    %c0_31 = arith.constant 0 : index
    %c0_32 = arith.constant 0 : index
    %62 = vector.load %arg11[%c0_31, %c0_32] : memref<8x32xf32, #tpu.memory_space<vmem>>, vector<8x32xf32>
    %cst_33 = arith.constant dense<0.000000e+00> : vector<8x32xf32>
    %63 = tpu.matmul %1, %62, %cst_33 {dimension_numbers = #tpu.dot_dimension_numbers<[1], [0], [0], [1], [0, 0, 1, 1], [], []>} : vector<8x8xf32>, vector<8x32xf32>, vector<8x32xf32> -> vector<8x32xf32>
    %c0_34 = arith.constant 0 : index
    %c0_35 = arith.constant 0 : index
    %64 = vector.load %arg12[%c0_34, %c0_35] : memref<1x32xf32, #tpu.memory_space<vmem>>, vector<1x32xf32>
    %65 = vector.broadcast %64 : vector<1x32xf32> to vector<8x32xf32>
    %66 = arith.addf %63, %65 : vector<8x32xf32>
    %67 = arith.addf %61, %66 : vector<8x32xf32>
    %cst_36 = arith.constant 0.000000e+00 : f32
    %68 = vector.broadcast %cst_36 : f32 to vector<8x32xf32>
    %69 = arith.maximumf %67, %68 : vector<8x32xf32>
    %c0_37 = arith.constant 0 : index
    %c0_38 = arith.constant 0 : index
    %70 = vector.load %arg13[%c0_37, %c0_38] : memref<32x32xf32, #tpu.memory_space<vmem>>, vector<32x32xf32>
    %cst_39 = arith.constant dense<0.000000e+00> : vector<8x32xf32>
    %71 = tpu.matmul %69, %70, %cst_39 {dimension_numbers = #tpu.dot_dimension_numbers<[1], [0], [0], [1], [0, 0, 1, 1], [], []>} : vector<8x32xf32>, vector<32x32xf32>, vector<8x32xf32> -> vector<8x32xf32>
    %c0_40 = arith.constant 0 : index
    %c0_41 = arith.constant 0 : index
    %72 = vector.load %arg14[%c0_40, %c0_41] : memref<1x32xf32, #tpu.memory_space<vmem>>, vector<1x32xf32>
    %73 = vector.broadcast %72 : vector<1x32xf32> to vector<8x32xf32>
    %74 = arith.addf %71, %73 : vector<8x32xf32>
    %c0_42 = arith.constant 0 : index
    %c0_43 = arith.constant 0 : index
    %75 = vector.load %arg15[%c0_42, %c0_43] : memref<1x32xf32, #tpu.memory_space<vmem>>, vector<1x32xf32>
    %c0_44 = arith.constant 0 : index
    %c0_45 = arith.constant 0 : index
    %76 = vector.load %arg16[%c0_44, %c0_45] : memref<1x32xf32, #tpu.memory_space<vmem>>, vector<1x32xf32>
    %cst_46 = arith.constant dense<0.000000e+00> : vector<8xf32>
    %77 = vector.multi_reduction <add>, %74, %cst_46 [1] : vector<8x32xf32> to vector<8xf32>
    %78 = vector.shape_cast %77 : vector<8xf32> to vector<8x1xf32>
    %79 = arith.mulf %74, %74 : vector<8x32xf32>
    %cst_47 = arith.constant dense<0.000000e+00> : vector<8xf32>
    %80 = vector.multi_reduction <add>, %79, %cst_47 [1] : vector<8x32xf32> to vector<8xf32>
    %81 = vector.shape_cast %80 : vector<8xf32> to vector<8x1xf32>
    %cst_48 = arith.constant 3.125000e-02 : f32
    %82 = vector.broadcast %cst_48 : f32 to vector<8x1xf32>
    %83 = arith.mulf %78, %82 : vector<8x1xf32>
    %cst_49 = arith.constant 3.125000e-02 : f32
    %84 = vector.broadcast %cst_49 : f32 to vector<8x1xf32>
    %85 = arith.mulf %81, %84 : vector<8x1xf32>
    %86 = arith.mulf %83, %83 : vector<8x1xf32>
    %87 = arith.subf %85, %86 : vector<8x1xf32>
    %88 = vector.broadcast %83 : vector<8x1xf32> to vector<8x32xf32>
    %89 = arith.subf %74, %88 : vector<8x32xf32>
    %cst_50 = arith.constant 9.99999974E-6 : f32
    %90 = vector.broadcast %cst_50 : f32 to vector<8x1xf32>
    %91 = arith.addf %87, %90 : vector<8x1xf32>
    %92 = math.rsqrt %91 : vector<8x1xf32>
    %93 = vector.broadcast %92 : vector<8x1xf32> to vector<8x32xf32>
    %94 = arith.mulf %89, %93 : vector<8x32xf32>
    %95 = vector.broadcast %75 : vector<1x32xf32> to vector<8x32xf32>
    %96 = arith.mulf %94, %95 : vector<8x32xf32>
    %97 = vector.broadcast %76 : vector<1x32xf32> to vector<8x32xf32>
    %98 = arith.addf %96, %97 : vector<8x32xf32>
    %cst_51 = arith.constant 0.000000e+00 : f32
    %99 = vector.broadcast %cst_51 : f32 to vector<8x32xf32>
    %100 = arith.maximumf %98, %99 : vector<8x32xf32>
    %c0_52 = arith.constant 0 : index
    %c0_53 = arith.constant 0 : index
    %101 = vector.load %arg17[%c0_52, %c0_53] : memref<1x32xf32, #tpu.memory_space<vmem>>, vector<1x32xf32>
    %102 = vector.broadcast %101 : vector<1x32xf32> to vector<8x32xf32>
    %103 = arith.mulf %100, %102 : vector<8x32xf32>
    %cst_54 = arith.constant dense<0.000000e+00> : vector<8xf32>
    %104 = vector.multi_reduction <add>, %103, %cst_54 [1] : vector<8x32xf32> to vector<8xf32>
    %105 = vector.shape_cast %104 : vector<8xf32> to vector<8x1xf32>
    %c0_55 = arith.constant 0 : index
    %c0_56 = arith.constant 0 : index
    %106 = vector.load %arg18[%c0_55, %c0_56] : memref<1x1xf32, #tpu.memory_space<vmem>>, vector<1x1xf32>
    %107 = vector.broadcast %106 : vector<1x1xf32> to vector<8x1xf32>
    %108 = arith.addf %105, %107 : vector<8x1xf32>
    %c0_57 = arith.constant 0 : index
    %c0_58 = arith.constant 0 : index
    %109 = vector.load %arg19[%c0_57, %c0_58] : memref<8x1xf32, #tpu.memory_space<vmem>>, vector<8x1xf32>
    tpu.vector_store %arg19[%c0_57, %c0_58], %108 {strides = array<i32>} : memref<8x1xf32, #tpu.memory_space<vmem>>, vector<8x1xf32>,
    return
  }
  func.func @transform_0(%arg0: i32) -> (i32, i32) {
    %c0_i32 = arith.constant 0 : i32
    %c0_i32_0 = arith.constant 0 : i32
    return %arg0, %c0_i32 : i32, i32
  }
  func.func @transform_1(%arg0: i32) -> (i32, i32) {
    %c0_i32 = arith.constant 0 : i32
    %c0_i32_0 = arith.constant 0 : i32
    return %arg0, %c0_i32 : i32, i32
  }
  func.func @transform_2(%arg0: i32) -> (i32, i32) {
    %c0_i32 = arith.constant 0 : i32
    %c0_i32_0 = arith.constant 0 : i32
    %c0_i32_1 = arith.constant 0 : i32
    return %c0_i32, %c0_i32_0 : i32, i32
  }
  func.func @transform_3(%arg0: i32) -> (i32, i32) {
    %c0_i32 = arith.constant 0 : i32
    %c0_i32_0 = arith.constant 0 : i32
    %c0_i32_1 = arith.constant 0 : i32
    return %c0_i32, %c0_i32_0 : i32, i32
  }
  func.func @transform_4(%arg0: i32) -> (i32, i32) {
    %c0_i32 = arith.constant 0 : i32
    %c0_i32_0 = arith.constant 0 : i32
    %c0_i32_1 = arith.constant 0 : i32
    return %c0_i32, %c0_i32_0 : i32, i32
  }
  func.func @transform_5(%arg0: i32) -> (i32, i32) {
    %c0_i32 = arith.constant 0 : i32
    %c0_i32_0 = arith.constant 0 : i32
    %c0_i32_1 = arith.constant 0 : i32
    return %c0_i32, %c0_i32_0 : i32, i32
  }
  func.func @transform_6(%arg0: i32) -> (i32, i32) {
    %c0_i32 = arith.constant 0 : i32
    %c0_i32_0 = arith.constant 0 : i32
    %c0_i32_1 = arith.constant 0 : i32
    return %c0_i32, %c0_i32_0 : i32, i32
  }
  func.func @transform_7(%arg0: i32) -> (i32, i32) {
    %c0_i32 = arith.constant 0 : i32
    %c0_i32_0 = arith.constant 0 : i32
    %c0_i32_1 = arith.constant 0 : i32
    return %c0_i32, %c0_i32_0 : i32, i32
  }
  func.func @transform_8(%arg0: i32) -> (i32, i32) {
    %c0_i32 = arith.constant 0 : i32
    %c0_i32_0 = arith.constant 0 : i32
    %c0_i32_1 = arith.constant 0 : i32
    return %c0_i32, %c0_i32_0 : i32, i32
  }
  func.func @transform_9(%arg0: i32) -> (i32, i32) {
    %c0_i32 = arith.constant 0 : i32
    %c0_i32_0 = arith.constant 0 : i32
    %c0_i32_1 = arith.constant 0 : i32
    return %c0_i32, %c0_i32_0 : i32, i32
  }
  func.func @transform_10(%arg0: i32) -> (i32, i32) {
    %c0_i32 = arith.constant 0 : i32
    %c0_i32_0 = arith.constant 0 : i32
    %c0_i32_1 = arith.constant 0 : i32
    return %c0_i32, %c0_i32_0 : i32, i32
  }
  func.func @transform_11(%arg0: i32) -> (i32, i32) {
    %c0_i32 = arith.constant 0 : i32
    %c0_i32_0 = arith.constant 0 : i32
    %c0_i32_1 = arith.constant 0 : i32
    return %c0_i32, %c0_i32_0 : i32, i32
  }
  func.func @transform_12(%arg0: i32) -> (i32, i32) {
    %c0_i32 = arith.constant 0 : i32
    %c0_i32_0 = arith.constant 0 : i32
    %c0_i32_1 = arith.constant 0 : i32
    return %c0_i32, %c0_i32_0 : i32, i32
  }
  func.func @transform_13(%arg0: i32) -> (i32, i32) {
    %c0_i32 = arith.constant 0 : i32
    %c0_i32_0 = arith.constant 0 : i32
    %c0_i32_1 = arith.constant 0 : i32
    return %c0_i32, %c0_i32_0 : i32, i32
  }
  func.func @transform_14(%arg0: i32) -> (i32, i32) {
    %c0_i32 = arith.constant 0 : i32
    %c0_i32_0 = arith.constant 0 : i32
    %c0_i32_1 = arith.constant 0 : i32
    return %c0_i32, %c0_i32_0 : i32, i32
  }
  func.func @transform_15(%arg0: i32) -> (i32, i32) {
    %c0_i32 = arith.constant 0 : i32
    %c0_i32_0 = arith.constant 0 : i32
    %c0_i32_1 = arith.constant 0 : i32
    return %c0_i32, %c0_i32_0 : i32, i32
  }
  func.func @transform_16(%arg0: i32) -> (i32, i32) {
    %c0_i32 = arith.constant 0 : i32
    %c0_i32_0 = arith.constant 0 : i32
    %c0_i32_1 = arith.constant 0 : i32
    return %c0_i32, %c0_i32_0 : i32, i32
  }
  func.func @transform_17(%arg0: i32) -> (i32, i32) {
    %c0_i32 = arith.constant 0 : i32
    %c0_i32_0 = arith.constant 0 : i32
    %c0_i32_1 = arith.constant 0 : i32
    return %c0_i32, %c0_i32_0 : i32, i32
  }
  func.func @transform_18(%arg0: i32) -> (i32, i32) {
    %c0_i32 = arith.constant 0 : i32
    %c0_i32_0 = arith.constant 0 : i32
    return %arg0, %c0_i32 : i32, i32
  }
}

</mosaic_0001>

<bundles_post_ra>
// kernel: tpu_custom_call.1
= control target key start
LH: loop header
LB: loop body
LE: loop exit
PB: predicated region body
PF: predicated region fallthrough
CT: control target
= control target key end

     0   :  { %v641_v0 = vmov 0.0|0.0   ;;  %vm642_vm0 = vmmov 0   ;;  %v643_v4 = vmov 0.0   ;;  %vm74_vm1 = vcmask 261120   ;;  %s857_s2 = inlined_call_operand.vmem [shape: f32[32,64], index: 2, kind: input, shape index: {}]   ;;  %s858_s0 = inlined_call_operand.vmem [shape: f32[8,32], index: 0, kind: input, shape index: {}]   ;;  %s859_s3 = inlined_call_operand.vmem [shape: f32[1,64], index: 3, kind: input, shape index: {}]   ;;  %s860_s6 = inlined_call_operand.vmem [shape: f32[64,32], index: 6, kind: input, shape index: {}]   ;;  %s861_s10 = inlined_call_operand.vmem [shape: f32[8,32], index: 10, kind: input, shape index: {}]   ;;  %s862_s1 = inlined_call_operand.vmem [shape: f32[8,8], index: 1, kind: input, shape index: {}]   ;;  %s863_s4 = inlined_call_operand.vmem [shape: f32[1,64], index: 4, kind: input, shape index: {}]   ;;  %s864_s5 = inlined_call_operand.vmem [shape: f32[1,64], index: 5, kind: input, shape index: {}]   ;;  %s865_s7 = inlined_call_operand.vmem [shape: f32[1,32], index: 7, kind: input, shape index: {}]   ;;  %s866_s12 = inlined_call_operand.vmem [shape: f32[32,32], index: 12, kind: input, shape index: {}]   ;;  %s867_s8 = inlined_call_operand.vmem [shape: f32[1,32], index: 8, kind: input, shape index: {}]   ;;  %s868_s11 = inlined_call_operand.vmem [shape: f32[1,32], index: 11, kind: input, shape index: {}]   ;;  %s869_s9 = inlined_call_operand.vmem [shape: f32[1,32], index: 9, kind: input, shape index: {}]   ;;  %s870_s13 = inlined_call_operand.vmem [shape: f32[1,32], index: 13, kind: input, shape index: {}]   ;;  %s871_s17 = inlined_call_operand.<no memory space> [shape: f32[1,1], index: 17, kind: input, shape index: {}]   ;;  %s872_s14 = inlined_call_operand.vmem [shape: f32[1,32], index: 14, kind: input, shape index: {}]   ;;  %s873_s15 = inlined_call_operand.vmem [shape: f32[1,32], index: 15, kind: input, shape index: {}]   ;;  %s874_s16 = inlined_call_operand.vmem [shape: f32[1,32], index: 16, kind: input, shape index: {}]   ;;  %s875_s18 = inlined_call_operand.vmem [shape: f32[8,1], index: 18, kind: output, shape index: {}]  }
   0x1   :  { %877 = sst [smem:[#allocation3_spill]] %s857_s2  ;;  %608 = vmatprep.subr.bf16.mxu0 %v641_v0  ;;  %570 = vmatprep.mubr.msk.f32.mxu0 %vm642_vm0, %v643_v4  ;;  %vm150_vm2 = vcmask 523264   ;;  %v181_v16 = vld [vmem:[%s860_s6] sm:$0xff]  ;;  %v182_v17 = vld [vmem:[%s860_s6 + $0x8] sm:$0xff]  ;;  %v183_v18 = vld [vmem:[%s860_s6 + $0x10] sm:$0xff]  ;;  %vm308_vm3 = vcmask 64512  }
   0x2   :  { %878 = sst [smem:[#allocation4_spill]] %s858_s0  ;;  %s880_s29 = sld [smem:[#allocation3_spill]]  ;;  %614 = vmatprep.subr.bf16.mxu1 %v641_v0  ;;  %589 = vmatprep.mubr.msk.f32.mxu1 %vm642_vm0, %v643_v4  ;;  %v615_v19 = vpack.c.bf16 %v182_v17, %v181_v16  ;;  %v184_v20 = vld [vmem:[%s860_s6 + $0x18] sm:$0xff]  ;;  %v185_v22 = vld [vmem:[%s860_s6 + $0x20] sm:$0xff]  ;;  %v186_v23 = vld [vmem:[%s860_s6 + $0x28] sm:$0xff]  ;;  %vm519_vm4 = vcmask 7168  }
   0x3   :  { %879 = sst [smem:[#allocation5_spill]] %s859_s3  ;;  %s881_s23 = sld [smem:[#allocation4_spill]]  ;;  %v618_v21 = vpack.c.bf16 %v184_v20, %v183_v18  ;;  %v621_v24 = vpack.c.bf16 %v186_v23, %v185_v22  ;;  %v187_v25 = vld [vmem:[%s860_s6 + $0x30] sm:$0xff]  ;;  %v188_v26 = vld [vmem:[%s860_s6 + $0x38] sm:$0xff]  ;;  %v300_v28 = vld [vmem:[%s861_s10] sm:$0xff] }
   0x4   :  { %s882_s26 = sld [smem:[#allocation5_spill]]  ;;  %616 = vmatpush3.bf16.msra.mxu1 %v615_v19  ;;  %v624_v27 = vpack.c.bf16 %v188_v26, %v187_v25  ;;  %v62_v29 = vld [vmem:[%s862_s1] sm:$0xff]  ;;  %v385_v53 = vld [vmem:[%s866_s12 + $0x8] sm:$0xff]  ;;  %v386_v57 = vld [vmem:[%s866_s12 + $0x10] sm:$0xff] }
   0x5   :  { %617 = vmatprep.subr.bf16.mxu1 %v641_v0  ;;  %v527_v39 = vld [vmem:[%s863_s4] ss:$0 sm:$0xff]  ;;  %v387_v58 = vld [vmem:[%s866_s12 + $0x18] sm:$0xff] }
   0x6   :  { %v528_v41 = vld [vmem:[%s864_s5] ss:$0 sm:$0xff]  ;;  %v630_v59 = vpack.c.bf16 %v387_v58, %v386_v57 }
   0x7   :  { %v529_v45 = vld [vmem:[%s865_s7] ss:$0 sm:$0xff] }
   0x8   :  { %v63_v1 = vld [vmem:[%s880_s29] sm:$0xff]  ;;  %v64_v2 = vld [vmem:[%s880_s29 + $0x8] sm:$0xff]  ;;  %v65_v3 = vld [vmem:[%s880_s29 + $0x10] sm:$0xff]  ;;  %619 = vmatpush3.bf16.msra.mxu1 %v618_v21  ;;  %v23_v21 = vstv %s871_s17 }
   0x9   :  { %v609_v5 = vpack.c.bf16 %v64_v2, %v63_v1  ;;  %v66_v6 = vld [vmem:[%s880_s29 + $0x18] sm:$0xff]  ;;  %v61_v8 = vld [vmem:[%s881_s23] sm:$0xff]  ;;  %620 = vmatprep.subr.bf16.mxu1 %v641_v0  ;;  %24 = vst [vmem:[#allocation2] sm:$0x1] %v23_v21 }
   0xa   :  { %v612_v7 = vpack.c.bf16 %v66_v6, %v65_v3  ;;  %v525_v9 = vld [vmem:[%s882_s26] ss:$0 sm:$0xff] }
   0xb   :  { %610 = vmatpush3.bf16.msra.mxu0 %v609_v5  ;;  %v384_v52 = vld [vmem:[%s866_s12] sm:$0xff] }
   0xc   :  { %611 = vmatprep.subr.bf16.mxu0 %v641_v0  ;;  %622 = vmatpush3.bf16.msra.mxu1 %v621_v24  ;;  %v627_v54 = vpack.c.bf16 %v385_v53, %v384_v52  ;;  %v531_v5 = vld [vmem:[%s867_s8] ss:$0 sm:$0xff] }
   0xd   :  { %623 = vmatprep.subr.bf16.mxu1 %v641_v0  ;;  %v533_v6 = vld [vmem:[%s868_s11] ss:$0 sm:$0xff] }
   0xf   :  { %613 = vmatpush3.bf16.msra.mxu0 %v612_v7 }
  0x10   :  { %592 = vmatprep.subr.mxu0 %v643_v4  ;;  %625 = vmatpush3.bf16.msra.mxu1 %v624_v27 }
  0x12   :  { %571 = vmatmul.mubr.msk.f32.vlgmr.msra.gmra.mrb[0].mxu0 %vm74_vm1, %v61_v8  ;;  %v532_v8 = vld [vmem:[%s869_s9] ss:$0 sm:$0xff] }
  0x13   :  { %594 = vmatprep.mubr.msk.f32.mxu0 %vm642_vm0, %v643_v4  ;;  %593 = vmatpush3.msra.mxu0 %v300_v28 }
  0x14   :  { %626 = vmatprep.subr.bf16.mxu0 %v641_v0 }
  0x16   :  { %595 = vmatmul.mubr.msk.f32.vlgmr.msra.gmra.mrb[2].mxu0 %vm308_vm3, %v62_v29 }
  0x17   :  { %605 = vmatprep.mubr.msk.f32.mxu0 %vm642_vm0, %v643_v4  ;;  %628 = vmatpush3.bf16.msra.mxu0 %v627_v54 }
  0x18   :  { %629 = vmatprep.subr.bf16.mxu0 %v641_v0 }
  0x1b   :  { %631 = vmatpush3.bf16.msra.mxu0 %v630_v59 }
  0xe5   :  { %v144_v10 = vpop.f32.mrb[0].mxu0 }
  0xe6   :  { %v145_v11 = vadd.f32 %v525_v9, %v144_v10  ;;  %v572_v12 = vpop.f32.mrb[1].mxu0 }
  0xe8   :  { %v151_v13 = vsel %vm150_vm2, %v145_v11, 0.0  ;;  %v154_v14 = vmul.f32 %v145_v11, %v145_v11 }
  0xe9   :  { %152 = vadd.xlane.f32.xlu0 %v151_v13  ;;  %v378_v55 = vpop.f32.mrb[2].mxu0 }
  0xea   :  { %v155_v15 = vsel %vm150_vm2, %v154_v14, 0.0  ;;  %v596_v56 = vpop.f32.mrb[3].mxu0  ;;  %v379_v10 = vadd.f32 %v533_v6, %v378_v55  ;;  %v535_v14 = vld [vmem:[%s870_s13] ss:$0 sm:$0xff] }
  0xed   :  { %156 = vadd.xlane.f32.xlu0 %v155_v15 }
 0x176   :  { %v153_v30 = vpop.xlane.xlu0 %152 }
 0x177   :  { %v158_v31 = vmul.f32 0.015625, %v153_v30 }
 0x179   :  { %v160_v33 = vmul.f32 %v158_v31, %v158_v31  ;;  %v162_v37 = vsub.f32 %v145_v11, %v158_v31  ;;  %v537_v31 = vld [vmem:[%s872_s14] ss:$0 sm:$0xff] }
 0x17a   :  { %v157_v32 = vpop.xlane.xlu0 %156 }
 0x17b   :  { %v159_v34 = vmul.f32 0.015625, %v157_v32 }
 0x17d   :  { %v161_v35 = vsub.f32 %v159_v34, %v160_v33  ;;  %v538_v33 = vld [vmem:[%s873_s15] ss:$0 sm:$0xff] }
 0x17f   :  { %v163_v36 = vadd.f32 1e-05, %v161_v35 }
 0x181   :  { %635 = vrsqrt.f32 %v163_v36  ;;  %v539_v36 = vld [vmem:[%s874_s16] ss:$0 sm:$0xff] }
 0x18b   :  { %v636_v38 = vpop.eup %635 }
 0x18c   :  { %v165_v40 = vmul.f32 %v636_v38, %v162_v37 }
 0x18e   :  { %v172_v42 = vmul.f32 %v527_v39, %v165_v40  ;;  %v540_v40 = vld [vmem:[#allocation2] ss:$0 sm:$0xff] }
 0x190   :  { %v179_v43 = vadd.f32 %v528_v41, %v172_v42 }
 0x192   :  { %v180_v44 = vmax.f32 %v179_v43, 0.0 }
 0x194   :  { %590 = vmatmul.mubr.msk.f32.vlgmr.msra.gmra.mrb[0].mxu1 %vm150_vm2, %v180_v44 }
 0x267   :  { %v265_v46 = vpop.f32.mrb[0].mxu1 }
 0x268   :  { %v266_v47 = vadd.f32 %v529_v45, %v265_v46  ;;  %v591_v48 = vpop.f32.mrb[1].mxu1 }
 0x26a   :  { %v271_v49 = vsel %vm74_vm1, %v266_v47, 0.0  ;;  %v274_v50 = vmul.f32 %v266_v47, %v266_v47 }
 0x26b   :  { %272 = vadd.xlane.f32.xlu1 %v271_v49 }
 0x26c   :  { %v275_v51 = vsel %vm74_vm1, %v274_v50, 0.0 }
 0x26f   :  { %276 = vadd.xlane.f32.xlu1 %v275_v51 }
 0x2f8   :  { %v273_v60 = vpop.xlane.xlu1 %272 }
 0x2f9   :  { %v278_v61 = vmul.f32 0.03125, %v273_v60 }
 0x2fb   :  { %v280_v63 = vmul.f32 %v278_v61, %v278_v61  ;;  %v282_v4 = vsub.f32 %v266_v47, %v278_v61 }
 0x2fc   :  { %v277_v62 = vpop.xlane.xlu1 %276 }
 0x2fd   :  { %v279_v1 = vmul.f32 0.03125, %v277_v62 }
 0x2ff   :  { %v281_v2 = vsub.f32 %v279_v1, %v280_v63 }
 0x301   :  { %v283_v3 = vadd.f32 1e-05, %v281_v2 }
 0x303   :  { %637 = vrsqrt.f32 %v283_v3 }
 0x30d   :  { %v638_v0 = vpop.eup %637 }
 0x30e   :  { %v285_v7 = vmul.f32 %v638_v0, %v282_v4 }
 0x310   :  { %v292_v9 = vmul.f32 %v531_v5, %v285_v7 }
 0x312   :  { %v299_v11 = vadd.f32 %v532_v8, %v292_v9 }
 0x314   :  { %v382_v12 = vadd.f32 %v379_v10, %v299_v11 }
 0x316   :  { %v383_v13 = vmax.f32 %v382_v12, 0.0 }
 0x318   :  { %606 = vmatmul.mubr.msk.f32.vlgmr.msra.gmra.mrb[4].mxu0 %vm74_vm1, %v383_v13 }
 0x3eb   :  { %v464_v15 = vpop.f32.mrb[4].mxu0 }
 0x3ec   :  { %v465_v16 = vadd.f32 %v535_v14, %v464_v15  ;;  %v607_v17 = vpop.f32.mrb[5].mxu0 }
 0x3ee   :  { %v470_v18 = vsel %vm74_vm1, %v465_v16, 0.0  ;;  %v473_v19 = vmul.f32 %v465_v16, %v465_v16 }
 0x3ef   :  { %471 = vadd.xlane.f32.xlu0 %v470_v18 }
 0x3f0   :  { %v474_v20 = vsel %vm74_vm1, %v473_v19, 0.0 }
 0x3f1   :  { %475 = vadd.xlane.f32.xlu1 %v474_v20 }
 0x47c   :  { %v472_v22 = vpop.xlane.xlu0 %471 }
 0x47d   :  { %v477_v23 = vmul.f32 0.03125, %v472_v22 }
 0x47e   :  { %v476_v24 = vpop.xlane.xlu1 %475 }
 0x47f   :  { %v479_v25 = vmul.f32 %v477_v23, %v477_v23  ;;  %v478_v26 = vmul.f32 0.03125, %v476_v24  ;;  %v481_v29 = vsub.f32 %v465_v16, %v477_v23 }
 0x481   :  { %v480_v27 = vsub.f32 %v478_v26, %v479_v25 }
 0x483   :  { %v482_v28 = vadd.f32 1e-05, %v480_v27 }
 0x485   :  { %639 = vrsqrt.f32 %v482_v28 }
 0x48f   :  { %v640_v30 = vpop.eup %639 }
 0x490   :  { %v484_v32 = vmul.f32 %v640_v30, %v481_v29 }
 0x492   :  { %v491_v34 = vmul.f32 %v537_v31, %v484_v32 }
 0x494   :  { %v498_v35 = vadd.f32 %v538_v33, %v491_v34 }
 0x496   :  { %v499_v37 = vmax.f32 %v498_v35, 0.0 }
 0x498   :  { %v507_v38 = vmul.f32 %v539_v36, %v499_v37 }
 0x49a   :  { %v508_v39 = vsel %vm74_vm1, %v507_v38, 0.0 }
 0x49b   :  { %509 = vadd.xlane.f32.xlu0 %v508_v39 }
 0x528   :  { %v510_v41 = vpop.xlane.xlu0 %509 }
 0x529   :  { %v518_v42 = vadd.f32 %v540_v40, %v510_v41 }
 0x52b   :  { %520 = vst.msk [vmem:[%s875_s18] sm:$0xff] %vm519_vm4, %v518_v42 }

</bundles_post_ra>
